<compile_context>
chip_gen: v5e
topology: v5e:2x2
jax: 0.10.0
libtpu: 0.0.40
codegen_flags: <defaults>
</compile_context>

<pallas_src>
import functools

import jax
import jax.numpy as jnp
import numpy as np
from jax.experimental import pallas as pl
from jax.experimental.pallas import tpu as pltpu

EPS = 1e-5


def adalayernorm_kernel(ts_ref, emb_ref, w_ref, bias_ref, x_ref, o_ref,
                        *, d_model, b_tile, num_emb):
    """One grid step == one (b_tile, s_tile, D) slab.

    ts_ref   : SMEM scalar-prefetch, (B,) int32 timesteps
    emb_ref  : (NE, D_emb) embedding table (full, resident in VMEM)
    w_ref    : (D_emb, 2*D) linear weight (full, resident in VMEM)
    bias_ref : (1, 2*D) linear bias
    x_ref    : (b_tile, s_tile, D) block of the input
    o_ref    : (b_tile, s_tile, D) block of the output
    """
    b0 = pl.program_id(0) * b_tile

    # --- batched temb path: Embedding -> SiLU -> Linear, once per grid step ------
    # Gather b_tile rows from the embedding table (static unrolled loop over the
    # batch tile; each row is a dynamic slice driven by an SMEM scalar). Indices
    # are clamped: Pallas performs no runtime bounds check on VMEM refs.
    rows = []
    for r in range(b_tile):
        idx = jnp.clip(ts_ref[b0 + r], 0, num_emb - 1)
        rows.append(emb_ref[pl.ds(idx, 1), :])
    t = rows[0] if b_tile == 1 else jnp.concatenate(rows, axis=0)   # (b_tile, D_emb)
    t = t.astype(jnp.float32)
    t = t * jax.nn.sigmoid(t)                                        # SiLU

    # ONE batched matmul for the whole batch tile (feedback item 1).
    proj = jnp.dot(t, w_ref[...].astype(jnp.float32),
                   preferred_element_type=jnp.float32)
    proj = proj + bias_ref[...].astype(jnp.float32)                  # (b_tile, 2*D)

    # chunk_dim == 1: shift first, then scale (matches temb.chunk(2, dim=1)).
    shift = proj[:, None, :d_model]                                  # (b_tile, 1, D)
    scale1 = 1.0 + proj[:, None, d_model:]                           # (b_tile, 1, D)

    # --- LayerNorm over last dim (no affine) + adaptive modulation ---------------
    # Fused one-pass moments: sum(x) and sum(x*x) are independent reductions,
    # var = E[x^2] - mean^2. Compute in f32 regardless of I/O dtype.
    x = x_ref[...].astype(jnp.float32)                               # (b_tile, s_tile, D)
    inv_d = 1.0 / d_model
    s1 = jnp.sum(x, axis=-1, keepdims=True)
    s2 = jnp.sum(x * x, axis=-1, keepdims=True)
    mean = s1 * inv_d
    var = s2 * inv_d - mean * mean
    xn = (x - mean) * jax.lax.rsqrt(var + EPS)

    o_ref[...] = (xn * scale1 + shift).astype(o_ref.dtype)


def _largest_divisor_leq(n, cap, multiple_of=1):
    """Largest t dividing n with t <= cap and (t % multiple_of == 0 or t == n)."""
    cap = max(1, min(n, cap))
    for t in range(cap, 0, -1):
        if n % t == 0 and (t % multiple_of == 0 or t == n):
            return t
    return n  # fall back to a single full-extent tile


def ada_layer_norm(x, timestep, emb_table, w, bias, *, b_tile=None, s_tile=None):
    B, S, D = x.shape
    ne, d_emb = emb_table.shape
    d_out = w.shape[1]
    assert d_out == 2 * D, "LayerNorm dim must equal output_dim // 2"

    itemsize = jnp.dtype(x.dtype).itemsize

    # Batch tile: process several (up to 8) batch rows per grid step so the temb
    # matmul is batched and per-step overhead is amortized.
    if b_tile is None:
        b_tile = _largest_divisor_leq(B, 8)

    # Sequence tile: biggest divisor of S under a conservative per-block budget
    # (~2 MiB per I/O block -> double-buffered in+out stays well inside the
    # smallest scoped-VMEM default across v5e/v6e/v7x). Must be a multiple of 8
    # (sublanes) or equal to full S.
    if s_tile is None:
        max_rows = max(8, (2 << 20) // max(1, b_tile * D * itemsize))
        s_tile = _largest_divisor_leq(S, max_rows, multiple_of=8)

    grid = (B // b_tile, S // s_tile)

    # Explicit scoped-VMEM request: double-buffered input + output blocks, the
    # resident parameter blocks, plus slack; capped at 56 MiB to stay v7x-safe
    # (64 MiB physical VMEM per TensorCore there).
    blk_bytes = b_tile * s_tile * D * itemsize
    param_bytes = 4 * (emb_table.size + w.size + bias.size)
    vmem_limit = int(min(max(6 * blk_bytes + 2 * param_bytes + (2 << 20), 16 << 20),
                         56 << 20))

    kernel = functools.partial(adalayernorm_kernel,
                               d_model=D, b_tile=b_tile, num_emb=ne)

    return pl.pallas_call(
        kernel,
        out_shape=jax.ShapeDtypeStruct((B, S, D), x.dtype),
        grid_spec=pltpu.PrefetchScalarGridSpec(
            num_scalar_prefetch=1,             # timestep -> SMEM
            grid=grid,
            in_specs=[
                # Small parameter tensors: constant block index -> Pallas keeps the
                # same VMEM block and does not re-copy it across grid steps.
                pl.BlockSpec((ne, d_emb), lambda b, s, ts: (0, 0)),     # embedding table
                pl.BlockSpec((d_emb, d_out), lambda b, s, ts: (0, 0)),  # linear weight
                pl.BlockSpec((1, d_out), lambda b, s, ts: (0, 0)),      # linear bias
                # Activations: a (b_tile, s_tile, D) slab per grid step.
                pl.BlockSpec((b_tile, s_tile, D), lambda b, s, ts: (b, s, 0)),
            ],
            out_specs=pl.BlockSpec((b_tile, s_tile, D), lambda b, s, ts: (b, s, 0)),
        ),
        compiler_params=pltpu.CompilerParams(
            # Every block is independent (temb recomputed per step), so both axes
            # are parallel -> v7x megacore sharding; neutral on single-TC chips.
            dimension_semantics=("parallel", "parallel"),
            vmem_limit_bytes=vmem_limit,
        ),
    )(timestep, emb_table, w, bias, x)


def ada_layer_norm_reference(x, timestep, emb_table, w, bias):
    """Pure-JAX reference mirroring the PyTorch forward (chunk_dim=1 path)."""
    D = x.shape[-1]
    temb = emb_table[timestep]                                   # Embedding
    temb = temb * jax.nn.sigmoid(temb)                           # SiLU
    temb = temb @ w + bias[0]                                    # Linear
    shift, scale = temb[:, :D], temb[:, D:]                      # chunk(2, dim=1)
    shift = shift[:, None, :]
    scale = scale[:, None, :]
    mean = jnp.mean(x, axis=-1, keepdims=True)
    var = jnp.mean(jnp.square(x - mean), axis=-1, keepdims=True)
    xn = (x - mean) / jnp.sqrt(var + EPS)                        # LayerNorm, no affine
    return xn * (1.0 + scale) + shift


if __name__ == "__main__":
    key = jax.random.PRNGKey(0)
    k1, k2, k3, k4, k5 = jax.random.split(key, 5)

    B, S = 2, 16
    D_EMB = 32        # embedding_dim
    NE = 16           # num_embeddings
    D = 32            # output_dim // 2  (output_dim = 2 * embedding_dim)

    # Deterministic synthetic parameters (shapes from the module's __init__).
    emb_table = 0.02 * jax.random.normal(k1, (NE, D_EMB), jnp.float32)     # nn.Embedding
    w = 0.1 * jax.random.normal(k2, (D_EMB, 2 * D), jnp.float32)           # nn.Linear weight (in, out)
    bias = 0.1 * jax.random.normal(k3, (1, 2 * D), jnp.float32)            # nn.Linear bias

    x = jax.random.normal(k4, (B, S, D), jnp.float32)
    timestep = jax.random.randint(k5, (B,), 0, NE, dtype=jnp.int32)

    out = ada_layer_norm(x, timestep, emb_table, w, bias)
    out = jax.block_until_ready(out)

    ref = ada_layer_norm_reference(x, timestep, emb_table, w, bias)
    np.testing.assert_allclose(np.asarray(out), np.asarray(ref), atol=2e-5, rtol=2e-5)

    print("KERNEL_OK")
</pallas_src>

<mosaic_0001>
module attributes {stable_mosaic.version = 11 : i64} {
  func.func @adalayernorm_kernel(%arg0: i32, %arg1: i32, %arg2: memref<2xi32, #tpu.memory_space<smem>>, %arg3: memref<16x32xf32, #tpu.memory_space<vmem>>, %arg4: memref<32x64xf32, #tpu.memory_space<vmem>>, %arg5: memref<1x64xf32, #tpu.memory_space<vmem>>, %arg6: memref<2x16x32xf32, #tpu.memory_space<vmem>>, %arg7: memref<2x16x32xf32, #tpu.memory_space<vmem>>) attributes {dimension_semantics = [#tpu.dimension_semantics<parallel>, #tpu.dimension_semantics<parallel>], iteration_bounds = array<i64: 1, 1>, scalar_prefetch = 1 : i64, scratch_operands = 0 : i64, tpu.core_type = #tpu.core_type<tc>, window_params = [{pipeline_mode = #tpu.pipeline_mode<synchronous>, transform_indices = @transform_0, window_bounds = array<i64: 16, 32>}, {pipeline_mode = #tpu.pipeline_mode<synchronous>, transform_indices = @transform_1, window_bounds = array<i64: 32, 64>}, {pipeline_mode = #tpu.pipeline_mode<synchronous>, transform_indices = @transform_2, window_bounds = array<i64: 1, 64>}, {transform_indices = @transform_3, window_bounds = array<i64: 2, 16, 32>}, {transform_indices = @transform_4, window_bounds = array<i64: 2, 16, 32>}]} {
    %c2_i32 = arith.constant 2 : i32
    %0 = arith.muli %arg0, %c2_i32 : i32
    %c0_i32 = arith.constant 0 : i32
    %1 = arith.addi %0, %c0_i32 : i32
    %2 = arith.index_cast %1 : i32 to index
    %3 = memref.load %arg2[%2] : memref<2xi32, #tpu.memory_space<smem>>
    %c0_i32_0 = arith.constant 0 : i32
    %c15_i32 = arith.constant 15 : i32
    %4 = arith.maxsi %c0_i32_0, %3 : i32
    %5 = arith.minsi %c15_i32, %4 : i32
    %6 = arith.index_cast %5 : i32 to index
    %c0 = arith.constant 0 : index
    %7 = vector.load %arg3[%6, %c0] : memref<16x32xf32, #tpu.memory_space<vmem>>, vector<1x32xf32>
    %c1_i32 = arith.constant 1 : i32
    %8 = arith.addi %0, %c1_i32 : i32
    %9 = arith.index_cast %8 : i32 to index
    %10 = memref.load %arg2[%9] : memref<2xi32, #tpu.memory_space<smem>>
    %c0_i32_1 = arith.constant 0 : i32
    %c15_i32_2 = arith.constant 15 : i32
    %11 = arith.maxsi %c0_i32_1, %10 : i32
    %12 = arith.minsi %c15_i32_2, %11 : i32
    %13 = arith.index_cast %12 : i32 to index
    %c0_3 = arith.constant 0 : index
    %14 = vector.load %arg3[%13, %c0_3] : memref<16x32xf32, #tpu.memory_space<vmem>>, vector<1x32xf32>
    %15 = tpu.concatenate %7, %14 in 0 : vector<1x32xf32>, vector<1x32xf32> -> vector<2x32xf32>
    %16 = arith.negf %15 : vector<2x32xf32>
    %17 = math.exp %16 : vector<2x32xf32>
    %cst = arith.constant 1.000000e+00 : f32
    %18 = vector.broadcast %cst : f32 to vector<2x32xf32>
    %19 = arith.addf %18, %17 : vector<2x32xf32>
    %20 = arith.divf %18, %19 : vector<2x32xf32>
    %21 = arith.mulf %15, %20 : vector<2x32xf32>
    %c0_4 = arith.constant 0 : index
    %c0_5 = arith.constant 0 : index
    %22 = vector.load %arg4[%c0_4, %c0_5] : memref<32x64xf32, #tpu.memory_space<vmem>>, vector<32x64xf32>
    %cst_6 = arith.constant dense<0.000000e+00> : vector<2x64xf32>
    %23 = tpu.matmul %21, %22, %cst_6 {dimension_numbers = #tpu.dot_dimension_numbers<[1], [0], [0], [1], [0, 0, 1, 1], [], []>} : vector<2x32xf32>, vector<32x64xf32>, vector<2x64xf32> -> vector<2x64xf32>
    %c0_7 = arith.constant 0 : index
    %c0_8 = arith.constant 0 : index
    %24 = vector.load %arg5[%c0_7, %c0_8] : memref<1x64xf32, #tpu.memory_space<vmem>>, vector<1x64xf32>
    %25 = vector.broadcast %24 : vector<1x64xf32> to vector<2x64xf32>
    %26 = arith.addf %23, %25 : vector<2x64xf32>
    %27 = vector.extract_strided_slice %26 {offsets = [0, 0], sizes = [2, 32], strides = [1, 1]} : vector<2x64xf32> to vector<2x32xf32>
    %28 = vector.shape_cast %27 : vector<2x32xf32> to vector<2x1x32xf32>
    %29 = vector.extract_strided_slice %26 {offsets = [0, 32], sizes = [2, 32], strides = [1, 1]} : vector<2x64xf32> to vector<2x32xf32>
    %30 = vector.shape_cast %29 : vector<2x32xf32> to vector<2x1x32xf32>
    %cst_9 = arith.constant 1.000000e+00 : f32
    %31 = vector.broadcast %cst_9 : f32 to vector<2x1x32xf32>
    %32 = arith.addf %31, %30 : vector<2x1x32xf32>
    %c0_10 = arith.constant 0 : index
    %c0_11 = arith.constant 0 : index
    %c0_12 = arith.constant 0 : index
    %33 = vector.load %arg6[%c0_10, %c0_11, %c0_12] : memref<2x16x32xf32, #tpu.memory_space<vmem>>, vector<2x16x32xf32>
    %cst_13 = arith.constant dense<0.000000e+00> : vector<2x16xf32>
    %34 = vector.multi_reduction <add>, %33, %cst_13 [2] : vector<2x16x32xf32> to vector<2x16xf32>
    %35 = vector.shape_cast %34 : vector<2x16xf32> to vector<2x16x1xf32>
    %36 = arith.mulf %33, %33 : vector<2x16x32xf32>
    %cst_14 = arith.constant dense<0.000000e+00> : vector<2x16xf32>
    %37 = vector.multi_reduction <add>, %36, %cst_14 [2] : vector<2x16x32xf32> to vector<2x16xf32>
    %38 = vector.shape_cast %37 : vector<2x16xf32> to vector<2x16x1xf32>
    %cst_15 = arith.constant 3.125000e-02 : f32
    %39 = vector.broadcast %cst_15 : f32 to vector<2x16x1xf32>
    %40 = arith.mulf %35, %39 : vector<2x16x1xf32>
    %cst_16 = arith.constant 3.125000e-02 : f32
    %41 = vector.broadcast %cst_16 : f32 to vector<2x16x1xf32>
    %42 = arith.mulf %38, %41 : vector<2x16x1xf32>
    %43 = arith.mulf %40, %40 : vector<2x16x1xf32>
    %44 = arith.subf %42, %43 : vector<2x16x1xf32>
    %45 = vector.broadcast %40 : vector<2x16x1xf32> to vector<2x16x32xf32>
    %46 = arith.subf %33, %45 : vector<2x16x32xf32>
    %cst_17 = arith.constant 9.99999974E-6 : f32
    %47 = vector.broadcast %cst_17 : f32 to vector<2x16x1xf32>
    %48 = arith.addf %44, %47 : vector<2x16x1xf32>
    %49 = math.rsqrt %48 : vector<2x16x1xf32>
    %50 = vector.broadcast %49 : vector<2x16x1xf32> to vector<2x16x32xf32>
    %51 = arith.mulf %46, %50 : vector<2x16x32xf32>
    %52 = vector.broadcast %32 : vector<2x1x32xf32> to vector<2x16x32xf32>
    %53 = arith.mulf %51, %52 : vector<2x16x32xf32>
    %54 = vector.broadcast %28 : vector<2x1x32xf32> to vector<2x16x32xf32>
    %55 = arith.addf %53, %54 : vector<2x16x32xf32>
    %c0_18 = arith.constant 0 : index
    %c0_19 = arith.constant 0 : index
    %c0_20 = arith.constant 0 : index
    %56 = vector.load %arg7[%c0_18, %c0_19, %c0_20] : memref<2x16x32xf32, #tpu.memory_space<vmem>>, vector<2x16x32xf32>
    tpu.vector_store %arg7[%c0_18, %c0_19, %c0_20], %55 {strides = array<i32>} : memref<2x16x32xf32, #tpu.memory_space<vmem>>, vector<2x16x32xf32>,
    return
  }
  func.func @transform_0(%arg0: i32, %arg1: i32, %arg2: memref<2xi32, #tpu.memory_space<smem>>) -> (i32, i32) {
    %c0_i32 = arith.constant 0 : i32
    %c0_i32_0 = arith.constant 0 : i32
    %c0_i32_1 = arith.constant 0 : i32
    return %c0_i32, %c0_i32_0 : i32, i32
  }
  func.func @transform_1(%arg0: i32, %arg1: i32, %arg2: memref<2xi32, #tpu.memory_space<smem>>) -> (i32, i32) {
    %c0_i32 = arith.constant 0 : i32
    %c0_i32_0 = arith.constant 0 : i32
    %c0_i32_1 = arith.constant 0 : i32
    return %c0_i32, %c0_i32_0 : i32, i32
  }
  func.func @transform_2(%arg0: i32, %arg1: i32, %arg2: memref<2xi32, #tpu.memory_space<smem>>) -> (i32, i32) {
    %c0_i32 = arith.constant 0 : i32
    %c0_i32_0 = arith.constant 0 : i32
    %c0_i32_1 = arith.constant 0 : i32
    return %c0_i32, %c0_i32_0 : i32, i32
  }
  func.func @transform_3(%arg0: i32, %arg1: i32, %arg2: memref<2xi32, #tpu.memory_space<smem>>) -> (i32, i32, i32) {
    %c0_i32 = arith.constant 0 : i32
    %c0_i32_0 = arith.constant 0 : i32
    return %arg0, %arg1, %c0_i32 : i32, i32, i32
  }
  func.func @transform_4(%arg0: i32, %arg1: i32, %arg2: memref<2xi32, #tpu.memory_space<smem>>) -> (i32, i32, i32) {
    %c0_i32 = arith.constant 0 : i32
    %c0_i32_0 = arith.constant 0 : i32
    return %arg0, %arg1, %c0_i32 : i32, i32, i32
  }
}

</mosaic_0001>

<bundles_post_ra>
// kernel: tpu_custom_call.1
= control target key start
LH: loop header
LB: loop body
LE: loop exit
PB: predicated region body
PF: predicated region fallthrough
CT: control target
= control target key end

     0   :  { %s454_s21 = smov [#allocation3]   ;;  %s578_s0 = inlined_call_operand.hbm [shape: s32[2], index: 0, kind: input, shape index: {}]   ;;  %s579_s1 = inlined_call_operand.hbm [shape: f32[16,32], index: 1, kind: input, shape index: {}]   ;;  %s580_s2 = inlined_call_operand.hbm [shape: f32[32,64], index: 2, kind: input, shape index: {}]   ;;  %s581_s3 = inlined_call_operand.vmem [shape: f32[1,64], index: 3, kind: input, shape index: {}]   ;;  %s582_s4 = inlined_call_operand.hbm [shape: f32[2,16,32], index: 4, kind: input, shape index: {}]   ;;  %s583_s5 = inlined_call_operand.hbm [shape: f32[2,16,32], index: 5, kind: output, shape index: {}]  }
   0x1   :  { %s11_s20 = sshll.u32 %s578_s0, 4  ;;  %s12_s20 = int_to_ptr.hbm [resolvable:$true] %s11_s20 }
   0x2   :  { %14 = dma.hbm_to_smem %s12_s20, 16, %s454_s21, [#allocation2] }
   0x3   :  { %446 = dma.done.wait [#allocation2], 16 }
   0x4   :  { %447 = vsyncadd [#allocation2], 4294967280 }
   0x5   :  { %17 = sfence }
   0x6   :  { %18 = vsyncpa [#allocation5], 0 }
   0x7   :  { %19 = vsyncpa [#allocation8], 0 }
   0x8   :  { %20 = vsyncpa [#allocation6], 0  ;;  %s38_s24 = sshll.u32 %s580_s2, 4  ;;  %s455_s25 = smov [#allocation7]   ;;  %s39_s24 = int_to_ptr.hbm [resolvable:$true] %s38_s24 }
   0x9   :  { %s40_s26 = sshll.u32 %s455_s25, 4  ;;  %s25_s0 = sshll.u32 %s579_s1, 4  ;;  %s41_s26 = int_to_ptr.vmem [resolvable:$true] %s40_s26  ;;  %s26_s0 = int_to_ptr.hbm [resolvable:$true] %s25_s0 }
   0xa   :  { %s456_s29 = smov 128   ;;  %s457_s30 = smov 8  }
   0xb   :  { %46 = dma.hbm_to_vmem [thread:$0]  %s39_s24, 512, %s41_s26, [#allocation8], %s456_s29, %s456_s29, %s457_s30  }
   0xc   :  { %s458_s6 = smov [#allocation4]   ;;  %s53_s2 = sshll.u32 %s582_s4, 4  ;;  %s54_s2 = int_to_ptr.hbm [resolvable:$true] %s53_s2 }
   0xd   :  { %s27_s7 = sshll.u32 %s458_s6, 4  ;;  %s459_s1 = smov [#allocation9]   ;;  %s28_s7 = int_to_ptr.vmem [resolvable:$true] %s27_s7 }
   0xe   :  { %33 = dma.hbm_to_vmem [thread:$0]  %s26_s0, 256, %s28_s7, [#allocation5], %s456_s29, %s456_s29, %s457_s30  }
   0xf   :  { %s55_s10 = sshll.u32 %s459_s1, 4  ;;  %s56_s10 = int_to_ptr.vmem [resolvable:$true] %s55_s10 }
  0x10   :  { %61 = dma.hbm_to_vmem [thread:$0]  %s54_s2, 512, %s56_s10, [#allocation8], %s456_s29, %s456_s29, %s457_s30  }
  0x11   :  { %448 = dma.done.wait [#allocation5], 256  }
  0x12   :  { %449 = vsyncadd [#allocation5], 4294967040 }
  0x13   :  { %450 = dma.done.wait [#allocation8], 1024  }
  0x14   :  { %451 = vsyncadd [#allocation8], 4294966272  ;;  %s75_s11 = sld [smem:[#allocation3]]  ;;  %v118_v0 = vld [vmem:[#allocation7 + $0x18] sm:$0xff]  ;;  %v117_v1 = vld [vmem:[#allocation7 + $0x10] sm:$0xff]  ;;  %vm93_vm0 = vcmask 1040384  }
  0x15   :  { %s305_s12 = sld [smem:[#allocation3 + $0x1]]  ;;  %139 = vmatpush.msra.mxu0 %v118_v0  ;;  %v116_v2 = vld [vmem:[#allocation7 + $0x8] sm:$0xff]  ;;  %v115_v3 = vld [vmem:[#allocation7] sm:$0xff]  ;;  %vm123_vm1 = vcmask 261120   ;;  %v515_v8 = vld [vmem:[#allocation9 + $0x10] sm:$0xff]  ;;  %s460_s16 = smov 96  }
  0x16   :  { %v513_v7 = vld [vmem:[#allocation9] sm:$0xff]  ;;  %v162_v11 = vsel %vm123_vm1, %v515_v8, 0.0  ;;  %v523_v14 = vld [vmem:[#allocation9 + $0x8] sm:$0xff]  ;;  %v525_v15 = vld [vmem:[#allocation9 + $0x18] sm:$0xff]  ;;  %v170_v23 = vmul.f32 %v515_v8, %v515_v8  ;;  %s284_s20 = sshll.u32 %s583_s5, 4  ;;  %s285_s20 = int_to_ptr.hbm [resolvable:$true] %s284_s20 }
  0x17   :  { %140 = vmatpush.msra.mxu0 %v117_v1  ;;  %v156_v10 = vsel %vm123_vm1, %v513_v7, 0.0  ;;  %163 = vadd.xlane.f32.xlu1 %v162_v11  ;;  %v168_v13 = vmul.f32 %v513_v7, %v513_v7  ;;  %v169_v17 = vmul.f32 %v523_v14, %v523_v14  ;;  %v159_v18 = vsel %vm123_vm1, %v523_v14, 0.0  ;;  %v325_v38 = vld [vmem:[%s581_s3] ss:$0 sm:$0xff]  ;;  %s461_s3 = smov [#allocation10]  }
  0x18   :  { %157 = vadd.xlane.f32.xlu0 %v156_v10  ;;  %v165_v19 = vsel %vm123_vm1, %v525_v15, 0.0  ;;  %v171_v24 = vmul.f32 %v525_v15, %v525_v15  ;;  %v178_v25 = vsel %vm123_vm1, %v170_v23, 0.0  ;;  %s282_s17 = sshll.u32 %s461_s3, 4  ;;  %s283_s17 = int_to_ptr.vmem [resolvable:$true] %s282_s17 }
  0x19   :  { %141 = vmatpush.msra.mxu0 %v116_v2  ;;  %v172_v16 = vsel %vm123_vm1, %v168_v13, 0.0  ;;  %v175_v21 = vsel %vm123_vm1, %v169_v17, 0.0 }
  0x1a   :  { %p76_p0 = scmp.gt.s32.totalorder %s75_s11, 0  ;;  %p300_p1 = scmp.lt.s32.totalorder %s75_s11, 15  ;;  %173 = vadd.xlane.f32.xlu2 %v172_v16  ;;  %v181_v26 = vsel %vm123_vm1, %v171_v24, 0.0 }
  0x1b   :  { %p84_p2 = scmp.gt.s32.totalorder %s305_s12, 0  ;;  %p306_p3 = scmp.lt.s32.totalorder %s305_s12, 15  ;;  %142 = vmatpush.msra.mxu0 %v115_v3 }
  0x1c   :  { %s585_s11 = smov (!%p76_p0, %s75_s11), 0 }
  0x1d   :  { %s587_s12 = smov (!%p84_p2, %s305_s12), 0  ;;  %s589_s11 = smov (!%p300_p1, %s585_s11), 15 }
  0x1e   :  { %s591_s12 = smov (!%p306_p3, %s587_s12), 15  ;;  %s80_s4 = scalar_lea.vmem [#allocation4], %s589_s11 }
  0x1f   :  { %v81_v4 = vld [vmem:[%s80_s4] sm:$0x1]  ;;  %s88_s13 = scalar_lea.vmem [#allocation4], %s591_s12  ;;  %166 = vadd.xlane.f32.xlu1 %v165_v19 }
  0x20   :  { %v89_v5 = vld [vmem:[%s88_s13] sm:$0x1]  ;;  %160 = vadd.xlane.f32.xlu0 %v159_v18 }
  0x21   :  { %v91_v6 = vrot.slane %v89_v5, 7 }
  0x22   :  { %176 = vadd.xlane.f32.xlu2 %v175_v21 }
  0x23   :  { %v94_v9 = vsel %vm93_vm0, %v81_v4, %v91_v6 }
  0x24   :  { %v311_v12 = vmul.f32 -1.442695, %v94_v9 }
  0x26   :  { %326 = vpow2.f32 %v311_v12 }
  0x27   :  { %182 = vadd.xlane.f32.xlu1 %v181_v26 }
  0x28   :  { %179 = vadd.xlane.f32.xlu0 %v178_v25 }
  0x2c   :  { %v327_v20 = vpop.eup %326 }
  0x2d   :  { %v98_v22 = vadd.f32 1.0, %v327_v20 }
  0x2f   :  { %328 = vrcp.f32 %v98_v22  ;;  %v110_v29 = vand.u32 2147483648, %v98_v22  ;;  %vm104_vm2 = vweird.f32 %v98_v22  ;;  %v108_v31 = vand.u32 2147483647, %v98_v22 }
  0x31   :  { %v111_v33 = vor.u32 1.1754944e-38, %v110_v29  ;;  %vm109_vm5 = vcmp.eq.f32.partialorder %v108_v31, 8.507059e+37 }
  0x35   :  { %v329_v27 = vpop.eup %328 }
  0x36   :  { %v100_v28 = vmul.f32 %v329_v27, %v98_v22  ;;  %vm105_vm3 = vweird.f32 %v329_v27 }
  0x37   :  { %vm106_vm4 = vmor %vm104_vm2, %vm105_vm3 }
  0x38   :  { %v101_v30 = vsub.f32 1.0, %v100_v28 }
  0x3a   :  { %v102_v32 = vmul.f32 %v329_v27, %v101_v30 }
  0x3c   :  { %v103_v34 = vadd.f32 %v329_v27, %v102_v32 }
  0x3e   :  { %v107_v35 = vsel %vm106_vm4, %v329_v27, %v103_v34 }
  0x3f   :  { %v112_v36 = vsel %vm109_vm5, %v111_v33, %v107_v35 }
  0x40   :  { %v114_v37 = vmul.f32 %v112_v36, %v94_v9 }
  0x42   :  { %312 = vmatmul.msk.f32.vlgmr.msra.gmra.mxu0 %vm123_vm1, %v114_v37 }
  0x8a   :  { %v164_v56 = vpop.xlane.xlu1 %163 }
  0x8b   :  { %v158_v46 = vpop.xlane.xlu0 %157  ;;  %v551_v0 = vmul.f32 0.03125, %v164_v56 }
  0x8c   :  { %v184_v48 = vmul.f32 0.03125, %v158_v46 }
  0x8d   :  { %v174_v47 = vpop.xlane.xlu2 %173  ;;  %v194_v6 = vmul.f32 %v551_v0, %v551_v0 }
  0x8e   :  { %v192_v52 = vmul.f32 %v184_v48, %v184_v48  ;;  %v188_v53 = vmul.f32 0.03125, %v174_v47  ;;  %v200_v26 = vsub.f32 %v513_v7, %v184_v48 }
  0x90   :  { %v196_v57 = vsub.f32 %v188_v53, %v192_v52 }
  0x92   :  { %v204_v59 = vadd.f32 1e-05, %v196_v57  ;;  %v167_v61 = vpop.xlane.xlu1 %166 }
  0x93   :  { %v161_v49 = vpop.xlane.xlu0 %160  ;;  %v553_v3 = vmul.f32 0.03125, %v167_v61 }
  0x94   :  { %v185_v50 = vmul.f32 0.03125, %v161_v49  ;;  %330 = vrsqrt.f32 %v204_v59  ;;  %vm214_vm6 = vweird.f32 %v204_v59 }
  0x95   :  { %v177_v51 = vpop.xlane.xlu2 %176  ;;  %v195_v12 = vmul.f32 %v553_v3, %v553_v3 }
  0x96   :  { %v193_v54 = vmul.f32 %v185_v50, %v185_v50  ;;  %v189_v55 = vmul.f32 0.03125, %v177_v51  ;;  %v201_v27 = vsub.f32 %v523_v14, %v185_v50  ;;  %v202_v50 = vsub.f32 %v515_v8, %v551_v0 }
  0x97   :  { %v203_v51 = vsub.f32 %v525_v15, %v553_v3 }
  0x98   :  { %v197_v58 = vsub.f32 %v189_v55, %v193_v54 }
  0x9a   :  { %v205_v60 = vadd.f32 1e-05, %v197_v58  ;;  %v331_v62 = vpop.eup %330  ;;  %v183_v5 = vpop.xlane.xlu1 %182 }
  0x9b   :  { %v209_v1 = vmul.f32 %v331_v62, %v204_v59  ;;  %v180_v4 = vpop.xlane.xlu0 %179  ;;  %v191_v13 = vmul.f32 0.03125, %v183_v5  ;;  %vm215_vm7 = vweird.f32 %v331_v62 }
  0x9c   :  { %332 = vrsqrt.f32 %v205_v60  ;;  %v190_v10 = vmul.f32 0.03125, %v180_v4  ;;  %vm224_vm8 = vweird.f32 %v205_v60  ;;  %vm216_vm10 = vmor %vm214_vm6, %vm215_vm7 }
  0x9d   :  { %v210_v9 = vmul.f32 %v331_v62, %v209_v1  ;;  %v199_v19 = vsub.f32 %v191_v13, %v195_v12 }
  0x9e   :  { %v198_v17 = vsub.f32 %v190_v10, %v194_v6 }
  0x9f   :  { %v211_v16 = vmul.f32 0.5, %v210_v9  ;;  %v207_v23 = vadd.f32 1e-05, %v199_v19 }
  0xa0   :  { %v206_v20 = vadd.f32 1e-05, %v198_v17 }
  0xa1   :  { %v212_v21 = vsub.f32 1.5, %v211_v16  ;;  %vm244_vm14 = vweird.f32 %v207_v23 }
  0xa2   :  { %v333_v63 = vpop.eup %332  ;;  %334 = vrsqrt.f32 %v206_v20  ;;  %vm234_vm12 = vweird.f32 %v206_v20 }
  0xa3   :  { %v219_v2 = vmul.f32 %v333_v63, %v205_v60  ;;  %vm225_vm9 = vweird.f32 %v333_v63  ;;  %v213_v24 = vmul.f32 %v331_v62, %v212_v21  ;;  %336 = vrsqrt.f32 %v207_v23 }
  0xa4   :  { %vm226_vm11 = vmor %vm224_vm8, %vm225_vm9 }
  0xa5   :  { %v220_v11 = vmul.f32 %v333_v63, %v219_v2  ;;  %v217_v28 = vsel %vm216_vm10, %v331_v62, %v213_v24 }
  0xa6   :  { %v248_v32 = vmul.f32 %v217_v28, %v200_v26 }
  0xa7   :  { %v221_v18 = vmul.f32 0.5, %v220_v11 }
  0xa8   :  { %v335_v30 = vpop.eup %334 }
  0xa9   :  { %v222_v22 = vsub.f32 1.5, %v221_v18  ;;  %v337_v31 = vpop.eup %336  ;;  %vm235_vm13 = vweird.f32 %v335_v30 }
  0xaa   :  { %vm245_vm15 = vweird.f32 %v337_v31  ;;  %vm236_vm0 = vmor %vm234_vm12, %vm235_vm13 }
  0xab   :  { %v223_v25 = vmul.f32 %v333_v63, %v222_v22  ;;  %vm246_vm2 = vmor %vm244_vm14, %vm245_vm15 }
  0xad   :  { %v227_v29 = vsel %vm226_vm11, %v333_v63, %v223_v25 }
  0xae   :  { %v249_v33 = vmul.f32 %v227_v29, %v201_v27 }
  0xbf   :  { %v144_v39 = vpop.f32.mrf.mxu0 }
  0xc0   :  { %v545_v40 = vadd.f32 %v325_v38, %v144_v39  ;;  %v229_v38 = vmul.f32 %v335_v30, %v206_v20  ;;  %v239_v39 = vmul.f32 %v337_v31, %v207_v23 }
  0xc2   :  { %v148_v41 = vrot.slane %v545_v40, 1  ;;  %v150_v42 = vadd.f32 1.0, %v545_v40  ;;  %v266_v35 = vperm.slane %v545_v40, 0  ;;  %v230_v7 = vmul.f32 %v335_v30, %v229_v38 }
  0xc4   :  { %v254_v43 = vperm.slane %v150_v42, 0  ;;  %v151_v44 = vadd.f32 1.0, %v148_v41  ;;  %v231_v14 = vmul.f32 0.5, %v230_v7  ;;  %v267_v57 = vperm.slane %v148_v41, 0 }
  0xc6   :  { %256 = vrot.lane.b32.xlu2 %v254_v43, %s460_s16  ;;  %v255_v45 = vperm.slane %v151_v44, 0  ;;  %v240_v44 = vmul.f32 %v337_v31, %v239_v39  ;;  %v232_v47 = vsub.f32 1.5, %v231_v14 }
  0xc8   :  { %258 = vrot.lane.b32.xlu0 %v255_v45, %s460_s16  ;;  %v241_v45 = vmul.f32 0.5, %v240_v44  ;;  %v233_v48 = vmul.f32 %v335_v30, %v232_v47 }
  0xca   :  { %v242_v46 = vsub.f32 1.5, %v241_v45  ;;  %v237_v52 = vsel %vm236_vm0, %v335_v30, %v233_v48 }
  0xcb   :  { %v250_v54 = vmul.f32 %v237_v52, %v202_v50 }
  0xcc   :  { %v243_v49 = vmul.f32 %v337_v31, %v242_v46 }
  0xce   :  { %v247_v53 = vsel %vm246_vm2, %v337_v31, %v243_v49 }
  0xcf   :  { %v251_v55 = vmul.f32 %v247_v53, %v203_v51 }
 0x120   :  { %v257_v34 = vpop.permute.xlu2 %256 }
 0x121   :  { %v262_v36 = vmul.f32 %v257_v34, %v248_v32  ;;  %v263_v37 = vmul.f32 %v257_v34, %v249_v33 }
 0x123   :  { %v270_v42 = vadd.f32 %v266_v35, %v262_v36  ;;  %v271_v43 = vadd.f32 %v266_v35, %v263_v37 }
 0x125   :  { %274 = vst.msk [vmem:[#allocation10] sm:$0xff] %vm123_vm1, %v270_v42 }
 0x126   :  { %275 = vst.msk [vmem:[#allocation10 + $0x8] sm:$0xff] %vm123_vm1, %v271_v43 }
 0x13a   :  { %v259_v56 = vpop.permute.xlu0 %258 }
 0x13b   :  { %v264_v58 = vmul.f32 %v259_v56, %v250_v54  ;;  %v265_v59 = vmul.f32 %v259_v56, %v251_v55 }
 0x13d   :  { %v272_v8 = vadd.f32 %v267_v57, %v264_v58  ;;  %v273_v60 = vadd.f32 %v267_v57, %v265_v59 }
 0x13f   :  { %276 = vst.msk [vmem:[#allocation10 + $0x10] sm:$0xff] %vm123_vm1, %v272_v8 }
 0x140   :  { %277 = vst.msk [vmem:[#allocation10 + $0x18] sm:$0xff] %vm123_vm1, %v273_v60 }
 0x141   :  { %290 = dma.vmem_to_hbm [thread:$0]  %s283_s17, 512, %s285_s20, [#allocation6], %s456_s29, %s456_s29, %s457_s30  }
 0x142   :  { %452 = dma.done.wait [#allocation6], 512  }
 0x143   :  { %453 = vsyncadd [#allocation6], 4294966784 }
 0x144   :  { %295 = vsyncpa [#allocation5], 1 }
 0x145   :  { %296 = vsyncpa [#allocation8], 1 }
 0x146   :  { %297 = vsyncpa [#allocation6], 1 }

</bundles_post_ra>
